<compile_context>
chip_gen: v5e
topology: v5e:2x2
jax: 0.10.0
libtpu: 0.0.40
codegen_flags: <defaults>
</compile_context>

<pallas_src>
import jax
import jax.numpy as jnp
from jax import lax
from jax.experimental import pallas as pl
from jax.experimental.pallas import tpu as pltpu


def decoder_rnn_kernel(x_ref, wih_ref, whh_ref, b_ref, wlin_ref, blin_ref, out_ref):
    """LSTM recurrence + Linear + log_softmax, all operands fully resident in VMEM.

    x_ref   : (T, E)      input sequence (batch = 1)
    wih_ref : (E, 4H)     LSTM input->gates weights (PyTorch weight_ih_l0^T)
    whh_ref : (H, 4H)     LSTM hidden->gates weights (PyTorch weight_hh_l0^T)
    b_ref   : (1, 4H)     bias_ih + bias_hh
    wlin_ref: (H, C)      hidden2sentence weight^T
    blin_ref: (1, C)      hidden2sentence bias
    out_ref : (T, C)      log-softmax scores
    """
    T = x_ref.shape[0]
    H = whh_ref.shape[0]

    x = x_ref[...]
    # Input contribution to all 4 gates for every timestep at once: one (T, 4H) MXU op.
    gates_x = jnp.dot(x, wih_ref[...], preferred_element_type=jnp.float32) + b_ref[...]
    w_hh = whh_ref[...]

    h = jnp.zeros((1, H), jnp.float32)   # self.init_hidden(): zeros (1, 1, H)
    c = jnp.zeros((1, H), jnp.float32)

    hs = []
    # Fully unrolled static recurrence (T is a compile-time constant).
    for t in range(T):
        gx = gates_x[t:t + 1, :]                                             # static slice
        gates = gx + jnp.dot(h, w_hh, preferred_element_type=jnp.float32)    # (1, 4H)

        # Single EUP push per step for the gate nonlinearities:
        #   tanh([0.5*gates ; gates]) -> sigmoid(gates) = 0.5*tanh(0.5*gates) + 0.5
        # (PyTorch nn.LSTM gate order: i, f, g, o).
        stacked = jnp.concatenate([0.5 * gates, gates], axis=0)              # (2, 4H)
        th = jnp.tanh(stacked)
        sig = 0.5 * th[0:1, :] + 0.5                                         # sigmoid(gates)
        tg = th[1:2, :]                                                      # tanh(gates)

        i = sig[:, 0 * H:1 * H]
        f = sig[:, 1 * H:2 * H]
        g = tg[:, 2 * H:3 * H]
        o = sig[:, 3 * H:4 * H]
        c = f * c + i * g
        h = o * jnp.tanh(c)
        hs.append(h)

    # Register-resident (T, H) hidden-state block (sublane concat; no VMEM round-trip).
    lstm_out = jnp.concatenate(hs, axis=0)                                   # (T, H)
    tag = jnp.dot(lstm_out, wlin_ref[...],
                  preferred_element_type=jnp.float32) + blin_ref[...]        # (T, C)

    # TODO(synk): reference calls F.log_softmax(tag_outputs, dim=len(captions)), which is
    # ill-defined for a 2-D tensor; we apply log_softmax over the last (class) axis, the
    # only sensible interpretation.
    m = jnp.max(tag, axis=-1, keepdims=True)
    lse = m + jnp.log(jnp.sum(jnp.exp(tag - m), axis=-1, keepdims=True))
    out_ref[...] = tag - lse


def init_params(key, embed_size, hidden_size, vocab_size, num_layers):
    """Deterministic synthetic parameters (already in kernel layout)."""
    ks = jax.random.split(key, 7)
    s = 0.1
    emb_table = s * jax.random.normal(ks[0], (vocab_size, embed_size), jnp.float32)
    w_ih = s * jax.random.normal(ks[1], (embed_size, 4 * hidden_size), jnp.float32)
    w_hh = s * jax.random.normal(ks[2], (hidden_size, 4 * hidden_size), jnp.float32)
    b_ih = s * jax.random.normal(ks[3], (4 * hidden_size,), jnp.float32)
    b_hh = s * jax.random.normal(ks[4], (4 * hidden_size,), jnp.float32)
    w_lin = s * jax.random.normal(ks[5], (hidden_size, num_layers), jnp.float32)
    b_lin = s * jax.random.normal(ks[6], (num_layers,), jnp.float32)
    return dict(emb=emb_table, w_ih=w_ih, w_hh=w_hh, b_ih=b_ih, b_hh=b_hh,
                w_lin=w_lin, b_lin=b_lin)


@jax.jit
def decoder_rnn_forward(params, features, captions):
    """Mirrors DecoderRNN.forward(features, captions).

    Note: the reference computes `embeds = self.embeddings(captions)` but never uses it
    in the returned value; the gather is omitted from the hot path (XLA would DCE it
    anyway under jit).  `captions` is kept in the signature for API parity.
    """
    del captions

    T, E = features.shape
    H = params["w_hh"].shape[0]
    C = params["w_lin"].shape[1]

    bias = (params["b_ih"] + params["b_hh"]).reshape(1, 4 * H)
    b_lin = params["b_lin"].reshape(1, C)

    out = pl.pallas_call(
        decoder_rnn_kernel,
        out_shape=jax.ShapeDtypeStruct((T, C), jnp.float32),
        # No grid: every operand is a whole-array VMEM block (skips pipeline overhead).
        in_specs=[pl.BlockSpec(memory_space=pltpu.MemorySpace.VMEM)] * 6,
        out_specs=pl.BlockSpec(memory_space=pltpu.MemorySpace.VMEM),
    )(features, params["w_ih"], params["w_hh"], bias, params["w_lin"], b_lin)
    return out


def reference_forward(params, features, captions):
    """Pure-JAX reference of the same semantics (for a correctness check)."""
    H = params["w_hh"].shape[0]
    bias = params["b_ih"] + params["b_hh"]

    def step(carry, x_t):
        h, c = carry
        gates = x_t @ params["w_ih"] + h @ params["w_hh"] + bias
        i = jax.nn.sigmoid(gates[0 * H:1 * H])
        f = jax.nn.sigmoid(gates[1 * H:2 * H])
        g = jnp.tanh(gates[2 * H:3 * H])
        o = jax.nn.sigmoid(gates[3 * H:4 * H])
        c = f * c + i * g
        h = o * jnp.tanh(c)
        return (h, c), h

    (_, _), hs = lax.scan(step, (jnp.zeros(H), jnp.zeros(H)), features)
    tag = hs @ params["w_lin"] + params["b_lin"]
    return jax.nn.log_softmax(tag, axis=-1)


if __name__ == "__main__":
    embed_size, hidden_size, vocab_size, num_layers = 32, 32, 50, 4
    T = 8  # sequence length (len(features))

    key = jax.random.PRNGKey(0)
    kp, kf, kc = jax.random.split(key, 3)
    params = init_params(kp, embed_size, hidden_size, vocab_size, num_layers)

    features = jax.random.normal(kf, (T, embed_size), jnp.float32)
    captions = jax.random.randint(kc, (T,), 0, vocab_size, jnp.int32)

    out = decoder_rnn_forward(params, features, captions)
    out = jax.block_until_ready(out)

    ref = reference_forward(params, features, captions)
    assert out.shape == (T, num_layers)
    # Slightly looser tolerance: sigmoid is computed via the exact 0.5*(1+tanh(x/2))
    # identity in-kernel, which can differ from the native logistic by a few ulp.
    assert jnp.allclose(out, ref, atol=1e-4, rtol=1e-4), "mismatch vs JAX reference"

    print("KERNEL_OK")
</pallas_src>

<mosaic_0001>
module attributes {stable_mosaic.version = 11 : i64} {
  func.func @decoder_rnn_kernel(%arg0: memref<8x32xf32, #tpu.memory_space<vmem>>, %arg1: memref<32x128xf32, #tpu.memory_space<vmem>>, %arg2: memref<32x128xf32, #tpu.memory_space<vmem>>, %arg3: memref<1x128xf32, #tpu.memory_space<vmem>>, %arg4: memref<32x4xf32, #tpu.memory_space<vmem>>, %arg5: memref<1x4xf32, #tpu.memory_space<vmem>>, %arg6: memref<8x4xf32, #tpu.memory_space<vmem>>) attributes {dimension_semantics = [], scalar_prefetch = 0 : i64, scratch_operands = 0 : i64, tpu.core_type = #tpu.core_type<tc>} {
    %c0 = arith.constant 0 : index
    %c0_0 = arith.constant 0 : index
    %0 = vector.load %arg0[%c0, %c0_0] : memref<8x32xf32, #tpu.memory_space<vmem>>, vector<8x32xf32>
    %c0_1 = arith.constant 0 : index
    %c0_2 = arith.constant 0 : index
    %1 = vector.load %arg1[%c0_1, %c0_2] : memref<32x128xf32, #tpu.memory_space<vmem>>, vector<32x128xf32>
    %cst = arith.constant dense<0.000000e+00> : vector<8x128xf32>
    %2 = tpu.matmul %0, %1, %cst {dimension_numbers = #tpu.dot_dimension_numbers<[1], [0], [0], [1], [0, 0, 1, 1], [], []>} : vector<8x32xf32>, vector<32x128xf32>, vector<8x128xf32> -> vector<8x128xf32>
    %c0_3 = arith.constant 0 : index
    %c0_4 = arith.constant 0 : index
    %3 = vector.load %arg3[%c0_3, %c0_4] : memref<1x128xf32, #tpu.memory_space<vmem>>, vector<1x128xf32>
    %4 = vector.broadcast %3 : vector<1x128xf32> to vector<8x128xf32>
    %5 = arith.addf %2, %4 : vector<8x128xf32>
    %c0_5 = arith.constant 0 : index
    %c0_6 = arith.constant 0 : index
    %6 = vector.load %arg2[%c0_5, %c0_6] : memref<32x128xf32, #tpu.memory_space<vmem>>, vector<32x128xf32>
    %cst_7 = arith.constant 0.000000e+00 : f32
    %7 = vector.broadcast %cst_7 : f32 to vector<1x32xf32>
    %cst_8 = arith.constant 0.000000e+00 : f32
    %8 = vector.broadcast %cst_8 : f32 to vector<1x32xf32>
    %9 = vector.extract_strided_slice %5 {offsets = [0, 0], sizes = [1, 128], strides = [1, 1]} : vector<8x128xf32> to vector<1x128xf32>
    %cst_9 = arith.constant dense<0.000000e+00> : vector<1x128xf32>
    %10 = tpu.matmul %7, %6, %cst_9 {dimension_numbers = #tpu.dot_dimension_numbers<[1], [0], [0], [1], [0, 0, 1, 1], [], []>} : vector<1x32xf32>, vector<32x128xf32>, vector<1x128xf32> -> vector<1x128xf32>
    %11 = arith.addf %9, %10 : vector<1x128xf32>
    %cst_10 = arith.constant 5.000000e-01 : f32
    %12 = vector.broadcast %cst_10 : f32 to vector<1x128xf32>
    %13 = arith.mulf %12, %11 : vector<1x128xf32>
    %14 = tpu.concatenate %13, %11 in 0 : vector<1x128xf32>, vector<1x128xf32> -> vector<2x128xf32>
    %15 = math.tanh %14 : vector<2x128xf32>
    %16 = vector.extract_strided_slice %15 {offsets = [0, 0], sizes = [1, 128], strides = [1, 1]} : vector<2x128xf32> to vector<1x128xf32>
    %cst_11 = arith.constant 5.000000e-01 : f32
    %17 = vector.broadcast %cst_11 : f32 to vector<1x128xf32>
    %18 = arith.mulf %17, %16 : vector<1x128xf32>
    %cst_12 = arith.constant 5.000000e-01 : f32
    %19 = vector.broadcast %cst_12 : f32 to vector<1x128xf32>
    %20 = arith.addf %18, %19 : vector<1x128xf32>
    %21 = vector.extract_strided_slice %15 {offsets = [1, 0], sizes = [1, 128], strides = [1, 1]} : vector<2x128xf32> to vector<1x128xf32>
    %22 = vector.extract_strided_slice %20 {offsets = [0, 0], sizes = [1, 32], strides = [1, 1]} : vector<1x128xf32> to vector<1x32xf32>
    %23 = vector.extract_strided_slice %20 {offsets = [0, 32], sizes = [1, 32], strides = [1, 1]} : vector<1x128xf32> to vector<1x32xf32>
    %24 = vector.extract_strided_slice %21 {offsets = [0, 64], sizes = [1, 32], strides = [1, 1]} : vector<1x128xf32> to vector<1x32xf32>
    %25 = vector.extract_strided_slice %20 {offsets = [0, 96], sizes = [1, 32], strides = [1, 1]} : vector<1x128xf32> to vector<1x32xf32>
    %26 = arith.mulf %23, %8 : vector<1x32xf32>
    %27 = arith.mulf %22, %24 : vector<1x32xf32>
    %28 = arith.addf %26, %27 : vector<1x32xf32>
    %29 = math.tanh %28 : vector<1x32xf32>
    %30 = arith.mulf %25, %29 : vector<1x32xf32>
    %31 = vector.extract_strided_slice %5 {offsets = [1, 0], sizes = [1, 128], strides = [1, 1]} : vector<8x128xf32> to vector<1x128xf32>
    %cst_13 = arith.constant dense<0.000000e+00> : vector<1x128xf32>
    %32 = tpu.matmul %30, %6, %cst_13 {dimension_numbers = #tpu.dot_dimension_numbers<[1], [0], [0], [1], [0, 0, 1, 1], [], []>} : vector<1x32xf32>, vector<32x128xf32>, vector<1x128xf32> -> vector<1x128xf32>
    %33 = arith.addf %31, %32 : vector<1x128xf32>
    %cst_14 = arith.constant 5.000000e-01 : f32
    %34 = vector.broadcast %cst_14 : f32 to vector<1x128xf32>
    %35 = arith.mulf %34, %33 : vector<1x128xf32>
    %36 = tpu.concatenate %35, %33 in 0 : vector<1x128xf32>, vector<1x128xf32> -> vector<2x128xf32>
    %37 = math.tanh %36 : vector<2x128xf32>
    %38 = vector.extract_strided_slice %37 {offsets = [0, 0], sizes = [1, 128], strides = [1, 1]} : vector<2x128xf32> to vector<1x128xf32>
    %cst_15 = arith.constant 5.000000e-01 : f32
    %39 = vector.broadcast %cst_15 : f32 to vector<1x128xf32>
    %40 = arith.mulf %39, %38 : vector<1x128xf32>
    %cst_16 = arith.constant 5.000000e-01 : f32
    %41 = vector.broadcast %cst_16 : f32 to vector<1x128xf32>
    %42 = arith.addf %40, %41 : vector<1x128xf32>
    %43 = vector.extract_strided_slice %37 {offsets = [1, 0], sizes = [1, 128], strides = [1, 1]} : vector<2x128xf32> to vector<1x128xf32>
    %44 = vector.extract_strided_slice %42 {offsets = [0, 0], sizes = [1, 32], strides = [1, 1]} : vector<1x128xf32> to vector<1x32xf32>
    %45 = vector.extract_strided_slice %42 {offsets = [0, 32], sizes = [1, 32], strides = [1, 1]} : vector<1x128xf32> to vector<1x32xf32>
    %46 = vector.extract_strided_slice %43 {offsets = [0, 64], sizes = [1, 32], strides = [1, 1]} : vector<1x128xf32> to vector<1x32xf32>
    %47 = vector.extract_strided_slice %42 {offsets = [0, 96], sizes = [1, 32], strides = [1, 1]} : vector<1x128xf32> to vector<1x32xf32>
    %48 = arith.mulf %45, %28 : vector<1x32xf32>
    %49 = arith.mulf %44, %46 : vector<1x32xf32>
    %50 = arith.addf %48, %49 : vector<1x32xf32>
    %51 = math.tanh %50 : vector<1x32xf32>
    %52 = arith.mulf %47, %51 : vector<1x32xf32>
    %53 = vector.extract_strided_slice %5 {offsets = [2, 0], sizes = [1, 128], strides = [1, 1]} : vector<8x128xf32> to vector<1x128xf32>
    %cst_17 = arith.constant dense<0.000000e+00> : vector<1x128xf32>
    %54 = tpu.matmul %52, %6, %cst_17 {dimension_numbers = #tpu.dot_dimension_numbers<[1], [0], [0], [1], [0, 0, 1, 1], [], []>} : vector<1x32xf32>, vector<32x128xf32>, vector<1x128xf32> -> vector<1x128xf32>
    %55 = arith.addf %53, %54 : vector<1x128xf32>
    %cst_18 = arith.constant 5.000000e-01 : f32
    %56 = vector.broadcast %cst_18 : f32 to vector<1x128xf32>
    %57 = arith.mulf %56, %55 : vector<1x128xf32>
    %58 = tpu.concatenate %57, %55 in 0 : vector<1x128xf32>, vector<1x128xf32> -> vector<2x128xf32>
    %59 = math.tanh %58 : vector<2x128xf32>
    %60 = vector.extract_strided_slice %59 {offsets = [0, 0], sizes = [1, 128], strides = [1, 1]} : vector<2x128xf32> to vector<1x128xf32>
    %cst_19 = arith.constant 5.000000e-01 : f32
    %61 = vector.broadcast %cst_19 : f32 to vector<1x128xf32>
    %62 = arith.mulf %61, %60 : vector<1x128xf32>
    %cst_20 = arith.constant 5.000000e-01 : f32
    %63 = vector.broadcast %cst_20 : f32 to vector<1x128xf32>
    %64 = arith.addf %62, %63 : vector<1x128xf32>
    %65 = vector.extract_strided_slice %59 {offsets = [1, 0], sizes = [1, 128], strides = [1, 1]} : vector<2x128xf32> to vector<1x128xf32>
    %66 = vector.extract_strided_slice %64 {offsets = [0, 0], sizes = [1, 32], strides = [1, 1]} : vector<1x128xf32> to vector<1x32xf32>
    %67 = vector.extract_strided_slice %64 {offsets = [0, 32], sizes = [1, 32], strides = [1, 1]} : vector<1x128xf32> to vector<1x32xf32>
    %68 = vector.extract_strided_slice %65 {offsets = [0, 64], sizes = [1, 32], strides = [1, 1]} : vector<1x128xf32> to vector<1x32xf32>
    %69 = vector.extract_strided_slice %64 {offsets = [0, 96], sizes = [1, 32], strides = [1, 1]} : vector<1x128xf32> to vector<1x32xf32>
    %70 = arith.mulf %67, %50 : vector<1x32xf32>
    %71 = arith.mulf %66, %68 : vector<1x32xf32>
    %72 = arith.addf %70, %71 : vector<1x32xf32>
    %73 = math.tanh %72 : vector<1x32xf32>
    %74 = arith.mulf %69, %73 : vector<1x32xf32>
    %75 = vector.extract_strided_slice %5 {offsets = [3, 0], sizes = [1, 128], strides = [1, 1]} : vector<8x128xf32> to vector<1x128xf32>
    %cst_21 = arith.constant dense<0.000000e+00> : vector<1x128xf32>
    %76 = tpu.matmul %74, %6, %cst_21 {dimension_numbers = #tpu.dot_dimension_numbers<[1], [0], [0], [1], [0, 0, 1, 1], [], []>} : vector<1x32xf32>, vector<32x128xf32>, vector<1x128xf32> -> vector<1x128xf32>
    %77 = arith.addf %75, %76 : vector<1x128xf32>
    %cst_22 = arith.constant 5.000000e-01 : f32
    %78 = vector.broadcast %cst_22 : f32 to vector<1x128xf32>
    %79 = arith.mulf %78, %77 : vector<1x128xf32>
    %80 = tpu.concatenate %79, %77 in 0 : vector<1x128xf32>, vector<1x128xf32> -> vector<2x128xf32>
    %81 = math.tanh %80 : vector<2x128xf32>
    %82 = vector.extract_strided_slice %81 {offsets = [0, 0], sizes = [1, 128], strides = [1, 1]} : vector<2x128xf32> to vector<1x128xf32>
    %cst_23 = arith.constant 5.000000e-01 : f32
    %83 = vector.broadcast %cst_23 : f32 to vector<1x128xf32>
    %84 = arith.mulf %83, %82 : vector<1x128xf32>
    %cst_24 = arith.constant 5.000000e-01 : f32
    %85 = vector.broadcast %cst_24 : f32 to vector<1x128xf32>
    %86 = arith.addf %84, %85 : vector<1x128xf32>
    %87 = vector.extract_strided_slice %81 {offsets = [1, 0], sizes = [1, 128], strides = [1, 1]} : vector<2x128xf32> to vector<1x128xf32>
    %88 = vector.extract_strided_slice %86 {offsets = [0, 0], sizes = [1, 32], strides = [1, 1]} : vector<1x128xf32> to vector<1x32xf32>
    %89 = vector.extract_strided_slice %86 {offsets = [0, 32], sizes = [1, 32], strides = [1, 1]} : vector<1x128xf32> to vector<1x32xf32>
    %90 = vector.extract_strided_slice %87 {offsets = [0, 64], sizes = [1, 32], strides = [1, 1]} : vector<1x128xf32> to vector<1x32xf32>
    %91 = vector.extract_strided_slice %86 {offsets = [0, 96], sizes = [1, 32], strides = [1, 1]} : vector<1x128xf32> to vector<1x32xf32>
    %92 = arith.mulf %89, %72 : vector<1x32xf32>
    %93 = arith.mulf %88, %90 : vector<1x32xf32>
    %94 = arith.addf %92, %93 : vector<1x32xf32>
    %95 = math.tanh %94 : vector<1x32xf32>
    %96 = arith.mulf %91, %95 : vector<1x32xf32>
    %97 = vector.extract_strided_slice %5 {offsets = [4, 0], sizes = [1, 128], strides = [1, 1]} : vector<8x128xf32> to vector<1x128xf32>
    %cst_25 = arith.constant dense<0.000000e+00> : vector<1x128xf32>
    %98 = tpu.matmul %96, %6, %cst_25 {dimension_numbers = #tpu.dot_dimension_numbers<[1], [0], [0], [1], [0, 0, 1, 1], [], []>} : vector<1x32xf32>, vector<32x128xf32>, vector<1x128xf32> -> vector<1x128xf32>
    %99 = arith.addf %97, %98 : vector<1x128xf32>
    %cst_26 = arith.constant 5.000000e-01 : f32
    %100 = vector.broadcast %cst_26 : f32 to vector<1x128xf32>
    %101 = arith.mulf %100, %99 : vector<1x128xf32>
    %102 = tpu.concatenate %101, %99 in 0 : vector<1x128xf32>, vector<1x128xf32> -> vector<2x128xf32>
    %103 = math.tanh %102 : vector<2x128xf32>
    %104 = vector.extract_strided_slice %103 {offsets = [0, 0], sizes = [1, 128], strides = [1, 1]} : vector<2x128xf32> to vector<1x128xf32>
    %cst_27 = arith.constant 5.000000e-01 : f32
    %105 = vector.broadcast %cst_27 : f32 to vector<1x128xf32>
    %106 = arith.mulf %105, %104 : vector<1x128xf32>
    %cst_28 = arith.constant 5.000000e-01 : f32
    %107 = vector.broadcast %cst_28 : f32 to vector<1x128xf32>
    %108 = arith.addf %106, %107 : vector<1x128xf32>
    %109 = vector.extract_strided_slice %103 {offsets = [1, 0], sizes = [1, 128], strides = [1, 1]} : vector<2x128xf32> to vector<1x128xf32>
    %110 = vector.extract_strided_slice %108 {offsets = [0, 0], sizes = [1, 32], strides = [1, 1]} : vector<1x128xf32> to vector<1x32xf32>
    %111 = vector.extract_strided_slice %108 {offsets = [0, 32], sizes = [1, 32], strides = [1, 1]} : vector<1x128xf32> to vector<1x32xf32>
    %112 = vector.extract_strided_slice %109 {offsets = [0, 64], sizes = [1, 32], strides = [1, 1]} : vector<1x128xf32> to vector<1x32xf32>
    %113 = vector.extract_strided_slice %108 {offsets = [0, 96], sizes = [1, 32], strides = [1, 1]} : vector<1x128xf32> to vector<1x32xf32>
    %114 = arith.mulf %111, %94 : vector<1x32xf32>
    %115 = arith.mulf %110, %112 : vector<1x32xf32>
    %116 = arith.addf %114, %115 : vector<1x32xf32>
    %117 = math.tanh %116 : vector<1x32xf32>
    %118 = arith.mulf %113, %117 : vector<1x32xf32>
    %119 = vector.extract_strided_slice %5 {offsets = [5, 0], sizes = [1, 128], strides = [1, 1]} : vector<8x128xf32> to vector<1x128xf32>
    %cst_29 = arith.constant dense<0.000000e+00> : vector<1x128xf32>
    %120 = tpu.matmul %118, %6, %cst_29 {dimension_numbers = #tpu.dot_dimension_numbers<[1], [0], [0], [1], [0, 0, 1, 1], [], []>} : vector<1x32xf32>, vector<32x128xf32>, vector<1x128xf32> -> vector<1x128xf32>
    %121 = arith.addf %119, %120 : vector<1x128xf32>
    %cst_30 = arith.constant 5.000000e-01 : f32
    %122 = vector.broadcast %cst_30 : f32 to vector<1x128xf32>
    %123 = arith.mulf %122, %121 : vector<1x128xf32>
    %124 = tpu.concatenate %123, %121 in 0 : vector<1x128xf32>, vector<1x128xf32> -> vector<2x128xf32>
    %125 = math.tanh %124 : vector<2x128xf32>
    %126 = vector.extract_strided_slice %125 {offsets = [0, 0], sizes = [1, 128], strides = [1, 1]} : vector<2x128xf32> to vector<1x128xf32>
    %cst_31 = arith.constant 5.000000e-01 : f32
    %127 = vector.broadcast %cst_31 : f32 to vector<1x128xf32>
    %128 = arith.mulf %127, %126 : vector<1x128xf32>
    %cst_32 = arith.constant 5.000000e-01 : f32
    %129 = vector.broadcast %cst_32 : f32 to vector<1x128xf32>
    %130 = arith.addf %128, %129 : vector<1x128xf32>
    %131 = vector.extract_strided_slice %125 {offsets = [1, 0], sizes = [1, 128], strides = [1, 1]} : vector<2x128xf32> to vector<1x128xf32>
    %132 = vector.extract_strided_slice %130 {offsets = [0, 0], sizes = [1, 32], strides = [1, 1]} : vector<1x128xf32> to vector<1x32xf32>
    %133 = vector.extract_strided_slice %130 {offsets = [0, 32], sizes = [1, 32], strides = [1, 1]} : vector<1x128xf32> to vector<1x32xf32>
    %134 = vector.extract_strided_slice %131 {offsets = [0, 64], sizes = [1, 32], strides = [1, 1]} : vector<1x128xf32> to vector<1x32xf32>
    %135 = vector.extract_strided_slice %130 {offsets = [0, 96], sizes = [1, 32], strides = [1, 1]} : vector<1x128xf32> to vector<1x32xf32>
    %136 = arith.mulf %133, %116 : vector<1x32xf32>
    %137 = arith.mulf %132, %134 : vector<1x32xf32>
    %138 = arith.addf %136, %137 : vector<1x32xf32>
    %139 = math.tanh %138 : vector<1x32xf32>
    %140 = arith.mulf %135, %139 : vector<1x32xf32>
    %141 = vector.extract_strided_slice %5 {offsets = [6, 0], sizes = [1, 128], strides = [1, 1]} : vector<8x128xf32> to vector<1x128xf32>
    %cst_33 = arith.constant dense<0.000000e+00> : vector<1x128xf32>
    %142 = tpu.matmul %140, %6, %cst_33 {dimension_numbers = #tpu.dot_dimension_numbers<[1], [0], [0], [1], [0, 0, 1, 1], [], []>} : vector<1x32xf32>, vector<32x128xf32>, vector<1x128xf32> -> vector<1x128xf32>
    %143 = arith.addf %141, %142 : vector<1x128xf32>
    %cst_34 = arith.constant 5.000000e-01 : f32
    %144 = vector.broadcast %cst_34 : f32 to vector<1x128xf32>
    %145 = arith.mulf %144, %143 : vector<1x128xf32>
    %146 = tpu.concatenate %145, %143 in 0 : vector<1x128xf32>, vector<1x128xf32> -> vector<2x128xf32>
    %147 = math.tanh %146 : vector<2x128xf32>
    %148 = vector.extract_strided_slice %147 {offsets = [0, 0], sizes = [1, 128], strides = [1, 1]} : vector<2x128xf32> to vector<1x128xf32>
    %cst_35 = arith.constant 5.000000e-01 : f32
    %149 = vector.broadcast %cst_35 : f32 to vector<1x128xf32>
    %150 = arith.mulf %149, %148 : vector<1x128xf32>
    %cst_36 = arith.constant 5.000000e-01 : f32
    %151 = vector.broadcast %cst_36 : f32 to vector<1x128xf32>
    %152 = arith.addf %150, %151 : vector<1x128xf32>
    %153 = vector.extract_strided_slice %147 {offsets = [1, 0], sizes = [1, 128], strides = [1, 1]} : vector<2x128xf32> to vector<1x128xf32>
    %154 = vector.extract_strided_slice %152 {offsets = [0, 0], sizes = [1, 32], strides = [1, 1]} : vector<1x128xf32> to vector<1x32xf32>
    %155 = vector.extract_strided_slice %152 {offsets = [0, 32], sizes = [1, 32], strides = [1, 1]} : vector<1x128xf32> to vector<1x32xf32>
    %156 = vector.extract_strided_slice %153 {offsets = [0, 64], sizes = [1, 32], strides = [1, 1]} : vector<1x128xf32> to vector<1x32xf32>
    %157 = vector.extract_strided_slice %152 {offsets = [0, 96], sizes = [1, 32], strides = [1, 1]} : vector<1x128xf32> to vector<1x32xf32>
    %158 = arith.mulf %155, %138 : vector<1x32xf32>
    %159 = arith.mulf %154, %156 : vector<1x32xf32>
    %160 = arith.addf %158, %159 : vector<1x32xf32>
    %161 = math.tanh %160 : vector<1x32xf32>
    %162 = arith.mulf %157, %161 : vector<1x32xf32>
    %163 = vector.extract_strided_slice %5 {offsets = [7, 0], sizes = [1, 128], strides = [1, 1]} : vector<8x128xf32> to vector<1x128xf32>
    %cst_37 = arith.constant dense<0.000000e+00> : vector<1x128xf32>
    %164 = tpu.matmul %162, %6, %cst_37 {dimension_numbers = #tpu.dot_dimension_numbers<[1], [0], [0], [1], [0, 0, 1, 1], [], []>} : vector<1x32xf32>, vector<32x128xf32>, vector<1x128xf32> -> vector<1x128xf32>
    %165 = arith.addf %163, %164 : vector<1x128xf32>
    %cst_38 = arith.constant 5.000000e-01 : f32
    %166 = vector.broadcast %cst_38 : f32 to vector<1x128xf32>
    %167 = arith.mulf %166, %165 : vector<1x128xf32>
    %168 = tpu.concatenate %167, %165 in 0 : vector<1x128xf32>, vector<1x128xf32> -> vector<2x128xf32>
    %169 = math.tanh %168 : vector<2x128xf32>
    %170 = vector.extract_strided_slice %169 {offsets = [0, 0], sizes = [1, 128], strides = [1, 1]} : vector<2x128xf32> to vector<1x128xf32>
    %cst_39 = arith.constant 5.000000e-01 : f32
    %171 = vector.broadcast %cst_39 : f32 to vector<1x128xf32>
    %172 = arith.mulf %171, %170 : vector<1x128xf32>
    %cst_40 = arith.constant 5.000000e-01 : f32
    %173 = vector.broadcast %cst_40 : f32 to vector<1x128xf32>
    %174 = arith.addf %172, %173 : vector<1x128xf32>
    %175 = vector.extract_strided_slice %169 {offsets = [1, 0], sizes = [1, 128], strides = [1, 1]} : vector<2x128xf32> to vector<1x128xf32>
    %176 = vector.extract_strided_slice %174 {offsets = [0, 0], sizes = [1, 32], strides = [1, 1]} : vector<1x128xf32> to vector<1x32xf32>
    %177 = vector.extract_strided_slice %174 {offsets = [0, 32], sizes = [1, 32], strides = [1, 1]} : vector<1x128xf32> to vector<1x32xf32>
    %178 = vector.extract_strided_slice %175 {offsets = [0, 64], sizes = [1, 32], strides = [1, 1]} : vector<1x128xf32> to vector<1x32xf32>
    %179 = vector.extract_strided_slice %174 {offsets = [0, 96], sizes = [1, 32], strides = [1, 1]} : vector<1x128xf32> to vector<1x32xf32>
    %180 = arith.mulf %177, %160 : vector<1x32xf32>
    %181 = arith.mulf %176, %178 : vector<1x32xf32>
    %182 = arith.addf %180, %181 : vector<1x32xf32>
    %183 = math.tanh %182 : vector<1x32xf32>
    %184 = arith.mulf %179, %183 : vector<1x32xf32>
    %185 = tpu.concatenate %30, %52, %74, %96, %118, %140, %162, %184 in 0 : vector<1x32xf32>, vector<1x32xf32>, vector<1x32xf32>, vector<1x32xf32>, vector<1x32xf32>, vector<1x32xf32>, vector<1x32xf32>, vector<1x32xf32> -> vector<8x32xf32>
    %c0_41 = arith.constant 0 : index
    %c0_42 = arith.constant 0 : index
    %186 = vector.load %arg4[%c0_41, %c0_42] : memref<32x4xf32, #tpu.memory_space<vmem>>, vector<32x4xf32>
    %cst_43 = arith.constant dense<0.000000e+00> : vector<8x4xf32>
    %187 = tpu.matmul %185, %186, %cst_43 {dimension_numbers = #tpu.dot_dimension_numbers<[1], [0], [0], [1], [0, 0, 1, 1], [], []>} : vector<8x32xf32>, vector<32x4xf32>, vector<8x4xf32> -> vector<8x4xf32>
    %c0_44 = arith.constant 0 : index
    %c0_45 = arith.constant 0 : index
    %188 = vector.load %arg5[%c0_44, %c0_45] : memref<1x4xf32, #tpu.memory_space<vmem>>, vector<1x4xf32>
    %189 = vector.broadcast %188 : vector<1x4xf32> to vector<8x4xf32>
    %190 = arith.addf %187, %189 : vector<8x4xf32>
    %cst_46 = arith.constant dense<0xFF800000> : vector<8xf32>
    %191 = vector.multi_reduction <maximumf>, %190, %cst_46 [1] : vector<8x4xf32> to vector<8xf32>
    %192 = vector.shape_cast %191 : vector<8xf32> to vector<8x1xf32>
    %193 = vector.broadcast %192 : vector<8x1xf32> to vector<8x4xf32>
    %194 = arith.subf %190, %193 : vector<8x4xf32>
    %195 = math.exp %194 : vector<8x4xf32>
    %cst_47 = arith.constant dense<0.000000e+00> : vector<8xf32>
    %196 = vector.multi_reduction <add>, %195, %cst_47 [1] : vector<8x4xf32> to vector<8xf32>
    %197 = vector.shape_cast %196 : vector<8xf32> to vector<8x1xf32>
    %198 = math.log %197 : vector<8x1xf32>
    %199 = arith.addf %192, %198 : vector<8x1xf32>
    %200 = vector.broadcast %199 : vector<8x1xf32> to vector<8x4xf32>
    %201 = arith.subf %190, %200 : vector<8x4xf32>
    %c0_48 = arith.constant 0 : index
    %c0_49 = arith.constant 0 : index
    %202 = vector.load %arg6[%c0_48, %c0_49] : memref<8x4xf32, #tpu.memory_space<vmem>>, vector<8x4xf32>
    tpu.vector_store %arg6[%c0_48, %c0_49], %201 {strides = array<i32>} : memref<8x4xf32, #tpu.memory_space<vmem>>, vector<8x4xf32>,
    return
  }
}

</mosaic_0001>

<bundles_post_ra>
// kernel: decoder_rnn_forward.1
= control target key start
LH: loop header
LB: loop body
LE: loop exit
PB: predicated region body
PF: predicated region fallthrough
CT: control target
= control target key end

     0   :  { %11 = vsyncpa [#allocation3], 0  ;;  %s876_s0 = inlined_call_operand.hbm [shape: f32[8,32], index: 0, kind: input, shape index: {}]   ;;  %s877_s1 = inlined_call_operand.vmem [shape: f32[32,128], index: 1, kind: input, shape index: {}]   ;;  %s878_s2 = inlined_call_operand.hbm [shape: f32[32,128], index: 2, kind: input, shape index: {}]   ;;  %s879_s3 = inlined_call_operand.vmem [shape: f32[1,128], index: 3, kind: input, shape index: {}]   ;;  %s880_s4 = inlined_call_operand.vmem [shape: f32[32,4], index: 4, kind: input, shape index: {}]   ;;  %s881_s5 = inlined_call_operand.vmem [shape: f32[1,4], index: 5, kind: input, shape index: {}]   ;;  %s882_s6 = inlined_call_operand.vmem [shape: f32[8,4], index: 6, kind: output, shape index: {}]  }
   0x1   :  { %s18_s23 = sshll.u32 %s876_s0, 4  ;;  %s19_s23 = int_to_ptr.hbm [resolvable:$true] %s18_s23 }
   0x2   :  { %12 = vsyncpa [#allocation5], 0  ;;  %s732_s24 = smov [#allocation2]   ;;  %s30_s28 = sshll.u32 %s878_s2, 4  ;;  %s31_s28 = int_to_ptr.hbm [resolvable:$true] %s30_s28 }
   0x3   :  { %s20_s25 = sshll.u32 %s732_s24, 4  ;;  %s733_s29 = smov [#allocation4]   ;;  %s21_s25 = int_to_ptr.vmem [resolvable:$true] %s20_s25 }
   0x4   :  { %23 = dma.hbm_to_vmem [thread:$0]  %s19_s23, 128, %s21_s25, [#allocation3]  }
   0x5   :  { %s32_s30 = sshll.u32 %s733_s29, 4  ;;  %s734_s7 = smov 128   ;;  %s33_s30 = int_to_ptr.vmem [resolvable:$true] %s32_s30 }
   0x6   :  { %s735_s8 = smov 8  }
   0x7   :  { %38 = dma.hbm_to_vmem [thread:$0]  %s31_s28, 512, %s33_s30, [#allocation5], %s734_s7, %s734_s7, %s735_s8  }
   0x8   :  { %728 = dma.done.wait [#allocation3], 128  }
   0x9   :  { %729 = vsyncadd [#allocation3], 4294967168 }
   0xa   :  { %730 = dma.done.wait [#allocation5], 512  }
   0xb   :  { %731 = vsyncadd [#allocation5], 4294966784  ;;  %v57_v0 = vld [vmem:[%s877_s1 + $0x18] sm:$0xff]  ;;  %v56_v1 = vld [vmem:[%s877_s1 + $0x10] sm:$0xff]  ;;  %vm62_vm0 = vcmask 261120   ;;  %v736_v9 = vmov 0.0  }
   0xc   :  { %v89_v2 = vld [vmem:[#allocation4 + $0x18] sm:$0xff]  ;;  %78 = vmatpush.msra.mxu0 %v57_v0  ;;  %v88_v3 = vld [vmem:[#allocation4 + $0x10] sm:$0xff]  ;;  %v55_v4 = vld [vmem:[%s877_s1 + $0x8] sm:$0xff]  ;;  %vm118_vm1 = vcmask 1040384   ;;  %s737_s16 = smov 64   ;;  %vm560_vm2 = vcmask 1041408  }
   0xd   :  { %105 = vmatpush.msra.mxu1 %v89_v2  ;;  %v87_v5 = vld [vmem:[#allocation4 + $0x8] sm:$0xff]  ;;  %158 = vmatpush.msra.mxu2 %v89_v2  ;;  %v54_v6 = vld [vmem:[%s877_s1] sm:$0xff]  ;;  %v86_v7 = vld [vmem:[#allocation4] sm:$0xff]  ;;  %vm562_vm3 = vcmask 1042432   ;;  %vm564_vm4 = vcmask 1043456   ;;  %vm566_vm5 = vcmask 1044480  }
   0xe   :  { %213 = vmatpush.msra.mxu3 %v89_v2  ;;  %79 = vmatpush.msra.mxu0 %v56_v1  ;;  %v53_v8 = vld [vmem:[#allocation2] sm:$0xff]  ;;  %vm568_vm6 = vcmask 1045504   ;;  %vm570_vm7 = vcmask 1046528   ;;  %vm605_vm8 = vcmask 31744  }
   0xf   :  { %106 = vmatpush.msra.mxu1 %v88_v3  ;;  %159 = vmatpush.msra.mxu2 %v88_v3  ;;  %v642_v10 = vld [vmem:[%s879_s3] ss:$0 sm:$0xff]  ;;  %s738_s3 = smov 32  }
  0x10   :  { %214 = vmatpush.msra.mxu3 %v88_v3  ;;  %80 = vmatpush.msra.mxu0 %v55_v4 }
  0x11   :  { %107 = vmatpush.msra.mxu1 %v87_v5  ;;  %160 = vmatpush.msra.mxu2 %v87_v5 }
  0x12   :  { %215 = vmatpush.msra.mxu3 %v87_v5  ;;  %81 = vmatpush.msra.mxu0 %v54_v6 }
  0x13   :  { %108 = vmatpush.msra.mxu1 %v86_v7  ;;  %626 = vmatmul.msk.f32.vlgmr.msra.gmra.mxu0 %vm62_vm0, %v53_v8 }
  0x14   :  { %109 = vmatmul.f32.vlgmr.msra.gmra.mxu1 %v736_v9  ;;  %161 = vmatpush.msra.mxu2 %v86_v7 }
  0x15   :  { %216 = vmatpush.msra.mxu3 %v86_v7  ;;  %271 = vmatpush.msrb.mxu0 %v89_v2 }
  0x16   :  { %329 = vmatpush.msrb.mxu1 %v89_v2  ;;  %387 = vmatpush.msrb.mxu2 %v89_v2 }
  0x17   :  { %445 = vmatpush.msrb.mxu3 %v89_v2  ;;  %272 = vmatpush.msrb.mxu0 %v88_v3 }
  0x18   :  { %330 = vmatpush.msrb.mxu1 %v88_v3  ;;  %388 = vmatpush.msrb.mxu2 %v88_v3 }
  0x19   :  { %446 = vmatpush.msrb.mxu3 %v88_v3  ;;  %273 = vmatpush.msrb.mxu0 %v87_v5 }
  0x1a   :  { %331 = vmatpush.msrb.mxu1 %v87_v5  ;;  %389 = vmatpush.msrb.mxu2 %v87_v5 }
  0x1b   :  { %447 = vmatpush.msrb.mxu3 %v87_v5  ;;  %274 = vmatpush.msrb.mxu0 %v86_v7 }
  0x1c   :  { %332 = vmatpush.msrb.mxu1 %v86_v7  ;;  %390 = vmatpush.msrb.mxu2 %v86_v7 }
  0x1d   :  { %448 = vmatpush.msrb.mxu3 %v86_v7  ;;  %503 = vmatpush.msra.mxu0 %v89_v2 }
  0x1f   :  { %504 = vmatpush.msra.mxu0 %v88_v3 }
  0x21   :  { %505 = vmatpush.msra.mxu0 %v87_v5 }
  0x23   :  { %506 = vmatpush.msra.mxu0 %v86_v7 }
  0x90   :  { %v83_v11 = vpop.f32.mrf.mxu0 }
  0x91   :  { %v110_v12 = vpop.f32.mrf.mxu1  ;;  %v796_v13 = vadd.f32 %v642_v10, %v83_v11 }
  0x93   :  { %v113_v14 = vadd.f32 %v110_v12, %v796_v13 }
  0x95   :  { %v114_v15 = vmul.f32 0.5, %v113_v14  ;;  %v116_v16 = vrot.slane %v113_v14, 7 }
  0x97   :  { %v119_v17 = vsel %vm118_vm1, %v114_v15, %v116_v16 }
  0x98   :  { %644 = vtanh.f32 %v119_v17 }
  0x9e   :  { %v645_v18 = vpop.eup %644 }
  0x9f   :  { %v125_v19 = vrot.slane %v645_v18, 1  ;;  %v121_v20 = vmul.f32 0.5, %v645_v18 }
  0xa1   :  { %126 = vrot.lane.b32.xlu0 %v125_v19, %s737_s16  ;;  %v122_v21 = vadd.f32 0.5, %v121_v20 }
  0xa3   :  { %v123_v24 = vmul.f32 0.0, %v122_v21 }
 0x113   :  { %v127_v22 = vpop.permute.xlu0 %126 }
 0x114   :  { %v129_v23 = vmul.f32 %v127_v22, %v122_v21 }
 0x116   :  { %131 = vrot.lane.b32.xlu0 %v129_v23, %s738_s3 }
 0x188   :  { %v132_v25 = vpop.permute.xlu0 %131 }
 0x189   :  { %v134_v26 = vadd.f32 %v132_v25, %v123_v24 }
 0x18b   :  { %646 = vtanh.f32 %v134_v26 }
 0x191   :  { %v647_v27 = vpop.eup %646 }
 0x192   :  { %137 = vrot.lane.b32.xlu1 %v647_v27, %s737_s16 }
 0x204   :  { %v138_v28 = vpop.permute.xlu1 %137 }
 0x205   :  { %v140_v29 = vmul.f32 %v138_v28, %v122_v21 }
 0x207   :  { %142 = vrot.lane.b32.xlu1 %v140_v29, %s738_s3 }
 0x279   :  { %v143_v30 = vpop.permute.xlu1 %142 }
 0x27a   :  { %627 = vmatmul.msk.f32.vlgmr.msra.gmra.mxu2 %vm62_vm0, %v143_v30 }
 0x2fd   :  { %v163_v31 = vpop.f32.mrf.mxu2 }
 0x2fe   :  { %v167_v32 = vrot.slane %v163_v31, 7 }
 0x300   :  { %v169_v33 = vadd.f32 %v167_v32, %v796_v13 }
 0x302   :  { %v170_v34 = vmul.f32 0.5, %v169_v33 }
 0x304   :  { %v172_v35 = vrot.slane %v170_v34, 1 }
 0x306   :  { %v174_v36 = vsel %vm118_vm1, %v172_v35, %v169_v33 }
 0x307   :  { %648 = vtanh.f32 %v174_v36 }
 0x30d   :  { %v649_v37 = vpop.eup %648 }
 0x30e   :  { %v180_v38 = vrot.slane %v649_v37, 1  ;;  %v176_v39 = vmul.f32 0.5, %v649_v37 }
 0x310   :  { %181 = vrot.lane.b32.xlu2 %v180_v38, %s737_s16  ;;  %v177_v40 = vadd.f32 0.5, %v176_v39 }
 0x312   :  { %v178_v43 = vmul.f32 %v177_v40, %v134_v26 }
 0x36a   :  { %v182_v41 = vpop.permute.xlu2 %181 }
 0x36b   :  { %v184_v42 = vmul.f32 %v182_v41, %v177_v40 }
 0x36d   :  { %186 = vrot.lane.b32.xlu2 %v184_v42, %s738_s3 }
 0x3c7   :  { %v187_v44 = vpop.permute.xlu2 %186 }
 0x3c8   :  { %v189_v45 = vadd.f32 %v187_v44, %v178_v43 }
 0x3ca   :  { %650 = vtanh.f32 %v189_v45 }
 0x3d0   :  { %v651_v46 = vpop.eup %650 }
 0x3d1   :  { %192 = vrot.lane.b32.xlu0 %v651_v46, %s737_s16 }
 0x443   :  { %v193_v47 = vpop.permute.xlu0 %192 }
 0x444   :  { %v195_v48 = vmul.f32 %v193_v47, %v177_v40 }
 0x446   :  { %197 = vrot.lane.b32.xlu1 %v195_v48, %s738_s3  ;;  %v544_v3 = vrot.slane %v195_v48, 7 }
 0x448   :  { %v559_v7 = vsel %vm118_vm1, %v140_v29, %v544_v3 }
 0x4b8   :  { %v198_v49 = vpop.permute.xlu1 %197 }
 0x4b9   :  { %628 = vmatmul.msk.f32.vlgmr.msra.gmra.mxu3 %vm62_vm0, %v198_v49 }
 0x53c   :  { %v218_v50 = vpop.f32.mrf.mxu3 }
 0x53d   :  { %v222_v51 = vrot.slane %v218_v50, 6 }
 0x53f   :  { %v224_v52 = vadd.f32 %v222_v51, %v796_v13 }
 0x541   :  { %v225_v53 = vmul.f32 0.5, %v224_v52  ;;  %v230_v55 = vrot.slane %v224_v52, 1 }
 0x543   :  { %v227_v54 = vrot.slane %v225_v53, 2 }
 0x545   :  { %v232_v56 = vsel %vm118_vm1, %v227_v54, %v230_v55 }
 0x546   :  { %652 = vtanh.f32 %v232_v56 }
 0x54c   :  { %v653_v57 = vpop.eup %652 }
 0x54d   :  { %v238_v58 = vrot.slane %v653_v57, 1  ;;  %v234_v59 = vmul.f32 0.5, %v653_v57 }
 0x54f   :  { %239 = vrot.lane.b32.xlu2 %v238_v58, %s737_s16  ;;  %v235_v60 = vadd.f32 0.5, %v234_v59 }
 0x551   :  { %v236_v63 = vmul.f32 %v235_v60, %v189_v45 }
 0x5a9   :  { %v240_v61 = vpop.permute.xlu2 %239 }
 0x5aa   :  { %v242_v62 = vmul.f32 %v240_v61, %v235_v60 }
 0x5ac   :  { %244 = vrot.lane.b32.xlu0 %v242_v62, %s738_s3 }
 0x61e   :  { %v245_v0 = vpop.permute.xlu0 %244 }
 0x61f   :  { %v247_v1 = vadd.f32 %v245_v0, %v236_v63 }
 0x621   :  { %654 = vtanh.f32 %v247_v1 }
 0x627   :  { %v655_v2 = vpop.eup %654 }
 0x628   :  { %250 = vrot.lane.b32.xlu1 %v655_v2, %s737_s16 }
 0x69a   :  { %v251_v4 = vpop.permute.xlu1 %250 }
 0x69b   :  { %v253_v5 = vmul.f32 %v251_v4, %v235_v60 }
 0x69d   :  { %v546_v6 = vrot.slane %v253_v5, 6  ;;  %255 = vrot.lane.b32.xlu2 %v253_v5, %s738_s3 }
 0x69f   :  { %v561_v8 = vsel %vm560_vm2, %v559_v7, %v546_v6 }
 0x6f7   :  { %v256_v9 = vpop.permute.xlu2 %255 }
 0x6f8   :  { %629 = vmatmul.msk.f32.vlgmr.msrb.gmra.mxu0 %vm62_vm0, %v256_v9 }
 0x775   :  { %v276_v10 = vpop.f32.mrf.mxu0 }
 0x776   :  { %v280_v11 = vrot.slane %v276_v10, 5 }
 0x778   :  { %v282_v12 = vadd.f32 %v280_v11, %v796_v13 }
 0x77a   :  { %v283_v14 = vmul.f32 0.5, %v282_v12  ;;  %v288_v16 = vrot.slane %v282_v12, 2 }
 0x77c   :  { %v285_v15 = vrot.slane %v283_v14, 3 }
 0x77e   :  { %v290_v17 = vsel %vm118_vm1, %v285_v15, %v288_v16 }
 0x77f   :  { %656 = vtanh.f32 %v290_v17 }
 0x785   :  { %v657_v18 = vpop.eup %656 }
 0x786   :  { %v296_v19 = vrot.slane %v657_v18, 1  ;;  %v292_v20 = vmul.f32 0.5, %v657_v18 }
 0x788   :  { %297 = vrot.lane.b32.xlu0 %v296_v19, %s737_s16  ;;  %v293_v21 = vadd.f32 0.5, %v292_v20 }
 0x78a   :  { %v294_v24 = vmul.f32 %v293_v21, %v247_v1 }
 0x7fa   :  { %v298_v22 = vpop.permute.xlu0 %297 }
 0x7fb   :  { %v300_v23 = vmul.f32 %v298_v22, %v293_v21 }
 0x7fd   :  { %302 = vrot.lane.b32.xlu1 %v300_v23, %s738_s3 }
 0x86f   :  { %v303_v25 = vpop.permute.xlu1 %302 }
 0x870   :  { %v305_v26 = vadd.f32 %v303_v25, %v294_v24 }
 0x872   :  { %658 = vtanh.f32 %v305_v26 }
 0x878   :  { %v659_v27 = vpop.eup %658 }
 0x879   :  { %308 = vrot.lane.b32.xlu2 %v659_v27, %s737_s16 }
 0x8d3   :  { %v309_v28 = vpop.permute.xlu2 %308 }
 0x8d4   :  { %v311_v29 = vmul.f32 %v309_v28, %v293_v21 }
 0x8d6   :  { %v548_v30 = vrot.slane %v311_v29, 5  ;;  %313 = vrot.lane.b32.xlu0 %v311_v29, %s738_s3 }
 0x8d8   :  { %v563_v31 = vsel %vm562_vm3, %v561_v8, %v548_v30 }
 0x948   :  { %v314_v32 = vpop.permute.xlu0 %313 }
 0x949   :  { %630 = vmatmul.msk.f32.vlgmr.msrb.gmra.mxu1 %vm62_vm0, %v314_v32 }
 0x9c6   :  { %v334_v33 = vpop.f32.mrf.mxu1 }
 0x9c7   :  { %v338_v34 = vrot.slane %v334_v33, 4 }
 0x9c9   :  { %v340_v35 = vadd.f32 %v338_v34, %v796_v13 }
 0x9cb   :  { %v341_v36 = vmul.f32 0.5, %v340_v35  ;;  %v346_v38 = vrot.slane %v340_v35, 3 }
 0x9cd   :  { %v343_v37 = vrot.slane %v341_v36, 4 }
 0x9cf   :  { %v348_v39 = vsel %vm118_vm1, %v343_v37, %v346_v38 }
 0x9d0   :  { %660 = vtanh.f32 %v348_v39 }
 0x9d6   :  { %v661_v40 = vpop.eup %660 }
 0x9d7   :  { %v354_v41 = vrot.slane %v661_v40, 1  ;;  %v350_v42 = vmul.f32 0.5, %v661_v40 }
 0x9d9   :  { %355 = vrot.lane.b32.xlu1 %v354_v41, %s737_s16  ;;  %v351_v43 = vadd.f32 0.5, %v350_v42 }
 0x9db   :  { %v352_v46 = vmul.f32 %v351_v43, %v305_v26 }
 0xa4b   :  { %v356_v44 = vpop.permute.xlu1 %355 }
 0xa4c   :  { %v358_v45 = vmul.f32 %v356_v44, %v351_v43 }
 0xa4e   :  { %360 = vrot.lane.b32.xlu2 %v358_v45, %s738_s3 }
 0xaa8   :  { %v361_v47 = vpop.permute.xlu2 %360 }
 0xaa9   :  { %v363_v48 = vadd.f32 %v361_v47, %v352_v46 }
 0xaab   :  { %662 = vtanh.f32 %v363_v48 }
 0xab1   :  { %v663_v49 = vpop.eup %662 }
 0xab2   :  { %366 = vrot.lane.b32.xlu0 %v663_v49, %s737_s16 }
 0xb24   :  { %v367_v50 = vpop.permute.xlu0 %366 }
 0xb25   :  { %v369_v51 = vmul.f32 %v367_v50, %v351_v43 }
 0xb27   :  { %v550_v52 = vrot.slane %v369_v51, 4  ;;  %371 = vrot.lane.b32.xlu1 %v369_v51, %s738_s3 }
 0xb29   :  { %v565_v53 = vsel %vm564_vm4, %v563_v31, %v550_v52  ;;  %v575_v52 = vld [vmem:[%s880_s4 + $0x18] sm:$0xff] }
 0xb2a   :  { %597 = vmatpush.msra.mxu1 %v575_v52 }
 0xb99   :  { %v372_v54 = vpop.permute.xlu1 %371 }
 0xb9a   :  { %631 = vmatmul.msk.f32.vlgmr.msrb.gmra.mxu2 %vm62_vm0, %v372_v54  ;;  %v573_v54 = vld [vmem:[%s880_s4 + $0x8] sm:$0xff] }
 0xc1d   :  { %v392_v55 = vpop.f32.mrf.mxu2 }
 0xc1e   :  { %v396_v56 = vrot.slane %v392_v55, 3  ;;  %v572_v55 = vld [vmem:[%s880_s4] sm:$0xff] }
 0xc20   :  { %v398_v57 = vadd.f32 %v396_v56, %v796_v13 }
 0xc22   :  { %v399_v58 = vmul.f32 0.5, %v398_v57  ;;  %v404_v60 = vrot.slane %v398_v57, 4 }
 0xc24   :  { %v401_v59 = vrot.slane %v399_v58, 5 }
 0xc26   :  { %v406_v61 = vsel %vm118_vm1, %v401_v59, %v404_v60 }
 0xc27   :  { %664 = vtanh.f32 %v406_v61  ;;  %v643_v61 = vld [vmem:[%s881_s5] ss:$0 sm:$0xff] }
 0xc2d   :  { %v665_v62 = vpop.eup %664 }
 0xc2e   :  { %v412_v63 = vrot.slane %v665_v62, 1  ;;  %v408_v0 = vmul.f32 0.5, %v665_v62 }
 0xc30   :  { %413 = vrot.lane.b32.xlu2 %v412_v63, %s737_s16  ;;  %v409_v1 = vadd.f32 0.5, %v408_v0 }
 0xc32   :  { %v410_v4 = vmul.f32 %v409_v1, %v363_v48 }
 0xc8a   :  { %v414_v2 = vpop.permute.xlu2 %413 }
 0xc8b   :  { %v416_v3 = vmul.f32 %v414_v2, %v409_v1 }
 0xc8d   :  { %418 = vrot.lane.b32.xlu0 %v416_v3, %s738_s3 }
 0xcff   :  { %v419_v5 = vpop.permute.xlu0 %418 }
 0xd00   :  { %v421_v6 = vadd.f32 %v419_v5, %v410_v4 }
 0xd02   :  { %666 = vtanh.f32 %v421_v6 }
 0xd08   :  { %v667_v7 = vpop.eup %666 }
 0xd09   :  { %424 = vrot.lane.b32.xlu1 %v667_v7, %s737_s16 }
 0xd7b   :  { %v425_v8 = vpop.permute.xlu1 %424 }
 0xd7c   :  { %v427_v9 = vmul.f32 %v425_v8, %v409_v1 }
 0xd7e   :  { %v552_v10 = vrot.slane %v427_v9, 3  ;;  %429 = vrot.lane.b32.xlu2 %v427_v9, %s738_s3 }
 0xd80   :  { %v567_v11 = vsel %vm566_vm5, %v565_v53, %v552_v10  ;;  %v574_v53 = vld [vmem:[%s880_s4 + $0x10] sm:$0xff] }
 0xd81   :  { %598 = vmatpush.msra.mxu1 %v574_v53 }
 0xd83   :  { %599 = vmatpush.msra.mxu1 %v573_v54 }
 0xd85   :  { %600 = vmatpush.msra.mxu1 %v572_v55 }
 0xdd8   :  { %v430_v12 = vpop.permute.xlu2 %429 }
 0xdd9   :  { %632 = vmatmul.msk.f32.vlgmr.msrb.gmra.mxu3 %vm62_vm0, %v430_v12 }
 0xe5c   :  { %v450_v14 = vpop.f32.mrf.mxu3 }
 0xe5d   :  { %v454_v15 = vrot.slane %v450_v14, 2 }
 0xe5f   :  { %v456_v16 = vadd.f32 %v454_v15, %v796_v13 }
 0xe61   :  { %v457_v17 = vmul.f32 0.5, %v456_v16  ;;  %v462_v19 = vrot.slane %v456_v16, 5 }
 0xe63   :  { %v459_v18 = vrot.slane %v457_v17, 6 }
 0xe65   :  { %v464_v20 = vsel %vm118_vm1, %v459_v18, %v462_v19 }
 0xe66   :  { %668 = vtanh.f32 %v464_v20 }
 0xe6c   :  { %v669_v21 = vpop.eup %668 }
 0xe6d   :  { %v470_v22 = vrot.slane %v669_v21, 1  ;;  %v466_v23 = vmul.f32 0.5, %v669_v21 }
 0xe6f   :  { %471 = vrot.lane.b32.xlu0 %v470_v22, %s737_s16  ;;  %v467_v24 = vadd.f32 0.5, %v466_v23 }
 0xe71   :  { %v468_v27 = vmul.f32 %v467_v24, %v421_v6 }
 0xee1   :  { %v472_v25 = vpop.permute.xlu0 %471 }
 0xee2   :  { %v474_v26 = vmul.f32 %v472_v25, %v467_v24 }
 0xee4   :  { %476 = vrot.lane.b32.xlu1 %v474_v26, %s738_s3 }
 0xf56   :  { %v477_v28 = vpop.permute.xlu1 %476 }
 0xf57   :  { %v479_v29 = vadd.f32 %v477_v28, %v468_v27 }
 0xf59   :  { %670 = vtanh.f32 %v479_v29 }
 0xf5f   :  { %v671_v30 = vpop.eup %670 }
 0xf60   :  { %482 = vrot.lane.b32.xlu2 %v671_v30, %s737_s16 }
 0xfba   :  { %v483_v31 = vpop.permute.xlu2 %482 }
 0xfbb   :  { %v485_v32 = vmul.f32 %v483_v31, %v467_v24 }
 0xfbd   :  { %v554_v33 = vrot.slane %v485_v32, 2  ;;  %487 = vrot.lane.b32.xlu0 %v485_v32, %s738_s3 }
 0xfbf   :  { %v569_v34 = vsel %vm568_vm6, %v567_v11, %v554_v33 }
0x102f   :  { %v488_v35 = vpop.permute.xlu0 %487 }
0x1030   :  { %633 = vmatmul.msk.f32.vlgmr.msra.gmra.mxu0 %vm62_vm0, %v488_v35 }
0x10ad   :  { %v508_v36 = vpop.f32.mrf.mxu0 }
0x10ae   :  { %v512_v37 = vrot.slane %v508_v36, 1 }
0x10b0   :  { %v514_v38 = vadd.f32 %v512_v37, %v796_v13 }
0x10b2   :  { %v515_v39 = vmul.f32 0.5, %v514_v38  ;;  %v520_v41 = vrot.slane %v514_v38, 6 }
0x10b4   :  { %v517_v40 = vrot.slane %v515_v39, 7 }
0x10b6   :  { %v522_v42 = vsel %vm118_vm1, %v517_v40, %v520_v41 }
0x10b7   :  { %672 = vtanh.f32 %v522_v42 }
0x10bd   :  { %v673_v43 = vpop.eup %672 }
0x10be   :  { %v528_v44 = vrot.slane %v673_v43, 1  ;;  %v524_v45 = vmul.f32 0.5, %v673_v43 }
0x10c0   :  { %529 = vrot.lane.b32.xlu1 %v528_v44, %s737_s16  ;;  %v525_v46 = vadd.f32 0.5, %v524_v45 }
0x10c2   :  { %v526_v49 = vmul.f32 %v525_v46, %v479_v29 }
0x1132   :  { %v530_v47 = vpop.permute.xlu1 %529 }
0x1133   :  { %v532_v48 = vmul.f32 %v530_v47, %v525_v46 }
0x1135   :  { %534 = vrot.lane.b32.xlu2 %v532_v48, %s738_s3 }
0x118f   :  { %v535_v50 = vpop.permute.xlu2 %534 }
0x1190   :  { %v537_v51 = vadd.f32 %v535_v50, %v526_v49 }
0x1192   :  { %674 = vtanh.f32 %v537_v51 }
0x1198   :  { %v675_v13 = vpop.eup %674 }
0x1199   :  { %540 = vrot.lane.b32.xlu0 %v675_v13, %s737_s16 }
0x120b   :  { %v541_v56 = vpop.permute.xlu0 %540 }
0x120c   :  { %v543_v57 = vmul.f32 %v541_v56, %v525_v46 }
0x120e   :  { %v557_v58 = vrot.slane %v543_v57, 1 }
0x1210   :  { %v571_v59 = vsel %vm570_vm7, %v569_v34, %v557_v58 }
0x1211   :  { %581 = vrot.lane.b32.xlu1 %v571_v59, %s738_s3 }
0x1283   :  { %v582_v60 = vpop.permute.xlu1 %581 }
0x1284   :  { %634 = vmatmul.msk.f32.vlgmr.msra.gmra.mxu1 %vm62_vm0, %v582_v60 }
0x1301   :  { %v602_v62 = vpop.f32.mrf.mxu1 }
0x1302   :  { %v603_v63 = vadd.f32 %v643_v61, %v602_v62 }
0x1304   :  { %v606_v0 = vsel %vm605_vm8, %v603_v63, -inf }
0x1305   :  { %607 = vmax.xlane.f32.xlu2 %v606_v0 }
0x1378   :  { %v608_v1 = vpop.xlane.xlu2 %607 }
0x1379   :  { %v609_v2 = vsub.f32 %v603_v63, %v608_v1 }
0x137b   :  { %v610_v3 = vmul.f32 1.442695, %v609_v2 }
0x137d   :  { %676 = vpow2.f32 %v610_v3 }
0x1383   :  { %v677_v4 = vpop.eup %676 }
0x1384   :  { %v612_v5 = vsel %vm605_vm8, %v677_v4, 0.0 }
0x1385   :  { %613 = vadd.xlane.f32.xlu0 %v612_v5 }
0x13f8   :  { %v614_v6 = vpop.xlane.xlu0 %613 }
0x13f9   :  { %678 = vlog2.f32 %v614_v6 }
0x13ff   :  { %v679_v7 = vpop.eup %678 }
0x1400   :  { %v616_v8 = vmul.f32 0.6931472, %v679_v7 }
0x1402   :  { %v617_v9 = vadd.f32 %v616_v8, %v608_v1 }
0x1404   :  { %v618_v10 = vsub.f32 %v603_v63, %v617_v9 }
0x1406   :  { %619 = vst.msk [vmem:[%s882_s6] sm:$0xff] %vm605_vm8, %v618_v10 }
0x1407   :  { %624 = vsyncpa [#allocation3], 1 }
0x1408   :  { %625 = vsyncpa [#allocation5], 1 }

</bundles_post_ra>
